<compile_context>
chip_gen: v5e
topology: v5e:2x2
jax: 0.10.0
libtpu: 0.0.40
codegen_flags: <defaults>
</compile_context>

<pallas_src>
import numpy as np

import jax
import jax.numpy as jnp
from jax.experimental import pallas as pl
from jax.experimental.pallas import tpu as pltpu


def _cross_attention_kernel(q_ref, k_ref, v_ref,
                            wq_ref, wk_ref, wv_ref,
                            bq_ref, bk_ref, bv_ref,
                            o_ref):
    bblk, sq, d = q_ref.shape
    _, sk, _ = k_ref.shape
    cdt = q_ref.dtype                    # matmul-input dtype (f32 or bf16)
    exact = cdt == jnp.float32           # strict-precision (pure f32) path?

    # ---- Projections: fold batch*seq into the matmul M dimension so the MXU
    # sees one (Bblk*S, D) x (D, D) matmul per projection, f32 accumulation.
    qf = q_ref[...].reshape(bblk * sq, d)
    kf = k_ref[...].reshape(bblk * sk, d)
    vf = v_ref[...].reshape(bblk * sk, d)

    q_proj = jnp.dot(qf, wq_ref[...], preferred_element_type=jnp.float32) + bq_ref[...]
    k_proj = jnp.dot(kf, wk_ref[...], preferred_element_type=jnp.float32) + bk_ref[...]
    v_proj = jnp.dot(vf, wv_ref[...], preferred_element_type=jnp.float32) + bv_ref[...]

    qp = q_proj.astype(cdt).reshape(bblk, sq, d)
    kp = k_proj.astype(cdt).reshape(bblk, sk, d)
    vp = v_proj.astype(cdt).reshape(bblk, sk, d)

    # ---- Scores: batched contraction over D with NO materialized k^T.
    # NOTE: the reference module does NOT scale by sqrt(D).
    scores = jnp.einsum("bqd,bkd->bqk", qp, kp,
                        preferred_element_type=jnp.float32)       # (Bblk,Sq,Sk)

    # ---- Numerically-stable softmax in f32; normalization deferred until
    # after attn @ V so the VPU multiply touches Sq*D, not Sq*Sk, elements.
    m = jnp.max(scores, axis=-1, keepdims=True)
    p = jnp.exp(scores - m)
    denom = jnp.sum(p, axis=-1, keepdims=True)

    out_unnorm = jnp.einsum("bqk,bkd->bqd", p.astype(cdt), vp,
                            preferred_element_type=jnp.float32)   # (Bblk,Sq,D)

    # Approximate reciprocal rides the EUP slot; keep the exact divide on the
    # strict f32 path so it matches the reference to 1e-4.
    inv = pl.reciprocal(denom, approx=not exact)
    o_ref[...] = (out_unnorm * inv).astype(o_ref.dtype)


def _pick_batch_block(B, Sq, Sk, D, in_itemsize, out_itemsize,
                      budget_bytes=8 * 1024 * 1024):
    """Largest divisor of B whose per-step pipelined working set fits the budget."""
    best = 1
    for bb in range(1, B + 1):
        if B % bb:
            continue
        io = bb * (Sq + 2 * Sk) * D * in_itemsize            # q/k/v input blocks
        out = bb * Sq * D * out_itemsize                      # output block
        live = bb * (Sq * Sk + (Sq + 2 * Sk) * D) * 4         # f32 scores + projections
        if 2 * (io + out) + live <= budget_bytes:             # x2: double-buffered DMA
            best = bb
    return best


def cross_attention(query, key, value, wq, wk, wv, bq, bk, bv, *,
                    compute_dtype=None, batch_block=None):
    """query: (B, Sq, D); key/value: (B, Sk, D); weights: (D, D); biases: (D,).

    compute_dtype: dtype of the MXU matmul inputs (default: input dtype; pass
    jnp.bfloat16 for ~2-4x MXU throughput).  Accumulation and softmax always
    run in f32; the output keeps the original input dtype.
    """
    B, Sq, D = query.shape
    _, Sk, _ = key.shape
    out_dtype = query.dtype
    cdt = np.dtype(compute_dtype) if compute_dtype is not None else np.dtype(out_dtype)

    # Cast matmul operands once in the wrapper (also halves HBM->VMEM traffic
    # for bf16).  Biases stay f32: they are added to the f32 accumulator.
    qx, kx, vx = (t.astype(cdt) for t in (query, key, value))
    wqx, wkx, wvx = (w.astype(cdt) for w in (wq, wk, wv))
    bq2 = bq.reshape(1, D).astype(jnp.float32)
    bk2 = bk.reshape(1, D).astype(jnp.float32)
    bv2 = bv.reshape(1, D).astype(jnp.float32)

    if batch_block is None:
        batch_block = _pick_batch_block(B, Sq, Sk, D, cdt.itemsize,
                                        np.dtype(out_dtype).itemsize)
    assert B % batch_block == 0, "batch_block must divide B"

    seq_spec = lambda s: pl.BlockSpec((batch_block, s, D), lambda b: (b, 0, 0))
    w_spec = pl.BlockSpec((D, D), lambda b: (0, 0))      # grid-invariant
    b_spec = pl.BlockSpec((1, D), lambda b: (0, 0))      # grid-invariant

    # TODO(synk): for large D on v7x (64 MiB VMEM) tile the weight blocks over
    # D_out and raise vmem_limit_bytes; for large Sq/Sk switch the scores/
    # softmax region to a flash-style Sk tiling with an online softmax.
    return pl.pallas_call(
        _cross_attention_kernel,
        out_shape=jax.ShapeDtypeStruct((B, Sq, D), out_dtype),
        grid_spec=pltpu.PrefetchScalarGridSpec(
            num_scalar_prefetch=0,
            grid=(B // batch_block,),
            in_specs=[
                seq_spec(Sq),        # query
                seq_spec(Sk),        # key
                seq_spec(Sk),        # value
                w_spec, w_spec, w_spec,
                b_spec, b_spec, b_spec,
            ],
            out_specs=seq_spec(Sq),
        ),
        compiler_params=pltpu.CompilerParams(
            # Batch blocks are independent -> shard across the 2 TCs on v7x.
            dimension_semantics=("parallel",),
        ),
    )(qx, kx, vx, wqx, wkx, wvx, bq2, bk2, bv2)


def _reference(query, key, value, wq, wk, wv, bq, bk, bv):
    q = query @ wq + bq
    k = key @ wk + bk
    v = value @ wv + bv
    scores = jnp.einsum("bqd,bkd->bqk", q, k)
    attn = jax.nn.softmax(scores, axis=-1)
    return jnp.einsum("bqk,bkd->bqd", attn, v)


if __name__ == "__main__":
    B, Sq, Sk, D = 2, 8, 8, 32
    key0 = jax.random.PRNGKey(0)
    ks = jax.random.split(key0, 9)

    query = jax.random.normal(ks[0], (B, Sq, D), dtype=jnp.float32)
    key_t = jax.random.normal(ks[1], (B, Sk, D), dtype=jnp.float32)
    value = jax.random.normal(ks[2], (B, Sk, D), dtype=jnp.float32)

    # Deterministic synthetic parameters (nn.Linear(input_dim, input_dim) x3).
    scale = 1.0 / jnp.sqrt(D)
    wq = jax.random.uniform(ks[3], (D, D), minval=-scale, maxval=scale, dtype=jnp.float32)
    wk = jax.random.uniform(ks[4], (D, D), minval=-scale, maxval=scale, dtype=jnp.float32)
    wv = jax.random.uniform(ks[5], (D, D), minval=-scale, maxval=scale, dtype=jnp.float32)
    bq = jax.random.uniform(ks[6], (D,), minval=-scale, maxval=scale, dtype=jnp.float32)
    bk = jax.random.uniform(ks[7], (D,), minval=-scale, maxval=scale, dtype=jnp.float32)
    bv = jax.random.uniform(ks[8], (D,), minval=-scale, maxval=scale, dtype=jnp.float32)

    ref = _reference(query, key_t, value, wq, wk, wv, bq, bk, bv)

    # Strict f32 path — must match the reference module to 1e-4.
    out = cross_attention(query, key_t, value, wq, wk, wv, bq, bk, bv)
    out = jax.block_until_ready(out)
    assert out.shape == (B, Sq, D)
    assert jnp.allclose(out, ref, atol=1e-4, rtol=1e-4), "f32 mismatch vs reference"

    print("KERNEL_OK")
</pallas_src>

<mosaic_0001>
module attributes {stable_mosaic.version = 11 : i64} {
  func.func @_cross_attention_kernel(%arg0: i32, %arg1: memref<2x8x32xf32, #tpu.memory_space<vmem>>, %arg2: memref<2x8x32xf32, #tpu.memory_space<vmem>>, %arg3: memref<2x8x32xf32, #tpu.memory_space<vmem>>, %arg4: memref<32x32xf32, #tpu.memory_space<vmem>>, %arg5: memref<32x32xf32, #tpu.memory_space<vmem>>, %arg6: memref<32x32xf32, #tpu.memory_space<vmem>>, %arg7: memref<1x32xf32, #tpu.memory_space<vmem>>, %arg8: memref<1x32xf32, #tpu.memory_space<vmem>>, %arg9: memref<1x32xf32, #tpu.memory_space<vmem>>, %arg10: memref<2x8x32xf32, #tpu.memory_space<vmem>>) attributes {dimension_semantics = [#tpu.dimension_semantics<parallel>], iteration_bounds = array<i64: 1>, scalar_prefetch = 0 : i64, scratch_operands = 0 : i64, tpu.core_type = #tpu.core_type<tc>, window_params = [{transform_indices = @transform_0, window_bounds = array<i64: 2, 8, 32>}, {transform_indices = @transform_1, window_bounds = array<i64: 2, 8, 32>}, {transform_indices = @transform_2, window_bounds = array<i64: 2, 8, 32>}, {pipeline_mode = #tpu.pipeline_mode<synchronous>, transform_indices = @transform_3, window_bounds = array<i64: 32, 32>}, {pipeline_mode = #tpu.pipeline_mode<synchronous>, transform_indices = @transform_4, window_bounds = array<i64: 32, 32>}, {pipeline_mode = #tpu.pipeline_mode<synchronous>, transform_indices = @transform_5, window_bounds = array<i64: 32, 32>}, {pipeline_mode = #tpu.pipeline_mode<synchronous>, transform_indices = @transform_6, window_bounds = array<i64: 1, 32>}, {pipeline_mode = #tpu.pipeline_mode<synchronous>, transform_indices = @transform_7, window_bounds = array<i64: 1, 32>}, {pipeline_mode = #tpu.pipeline_mode<synchronous>, transform_indices = @transform_8, window_bounds = array<i64: 1, 32>}, {transform_indices = @transform_9, window_bounds = array<i64: 2, 8, 32>}]} {
    %c0 = arith.constant 0 : index
    %c0_0 = arith.constant 0 : index
    %c0_1 = arith.constant 0 : index
    %0 = vector.load %arg1[%c0, %c0_0, %c0_1] : memref<2x8x32xf32, #tpu.memory_space<vmem>>, vector<2x8x32xf32>
    %1 = vector.shape_cast %0 : vector<2x8x32xf32> to vector<16x32xf32>
    %c0_2 = arith.constant 0 : index
    %c0_3 = arith.constant 0 : index
    %c0_4 = arith.constant 0 : index
    %2 = vector.load %arg2[%c0_2, %c0_3, %c0_4] : memref<2x8x32xf32, #tpu.memory_space<vmem>>, vector<2x8x32xf32>
    %3 = vector.shape_cast %2 : vector<2x8x32xf32> to vector<16x32xf32>
    %c0_5 = arith.constant 0 : index
    %c0_6 = arith.constant 0 : index
    %c0_7 = arith.constant 0 : index
    %4 = vector.load %arg3[%c0_5, %c0_6, %c0_7] : memref<2x8x32xf32, #tpu.memory_space<vmem>>, vector<2x8x32xf32>
    %5 = vector.shape_cast %4 : vector<2x8x32xf32> to vector<16x32xf32>
    %c0_8 = arith.constant 0 : index
    %c0_9 = arith.constant 0 : index
    %6 = vector.load %arg4[%c0_8, %c0_9] : memref<32x32xf32, #tpu.memory_space<vmem>>, vector<32x32xf32>
    %cst = arith.constant dense<0.000000e+00> : vector<16x32xf32>
    %7 = tpu.matmul %1, %6, %cst {dimension_numbers = #tpu.dot_dimension_numbers<[1], [0], [0], [1], [0, 0, 1, 1], [], []>} : vector<16x32xf32>, vector<32x32xf32>, vector<16x32xf32> -> vector<16x32xf32>
    %c0_10 = arith.constant 0 : index
    %c0_11 = arith.constant 0 : index
    %8 = vector.load %arg7[%c0_10, %c0_11] : memref<1x32xf32, #tpu.memory_space<vmem>>, vector<1x32xf32>
    %9 = vector.broadcast %8 : vector<1x32xf32> to vector<16x32xf32>
    %10 = arith.addf %7, %9 : vector<16x32xf32>
    %c0_12 = arith.constant 0 : index
    %c0_13 = arith.constant 0 : index
    %11 = vector.load %arg5[%c0_12, %c0_13] : memref<32x32xf32, #tpu.memory_space<vmem>>, vector<32x32xf32>
    %cst_14 = arith.constant dense<0.000000e+00> : vector<16x32xf32>
    %12 = tpu.matmul %3, %11, %cst_14 {dimension_numbers = #tpu.dot_dimension_numbers<[1], [0], [0], [1], [0, 0, 1, 1], [], []>} : vector<16x32xf32>, vector<32x32xf32>, vector<16x32xf32> -> vector<16x32xf32>
    %c0_15 = arith.constant 0 : index
    %c0_16 = arith.constant 0 : index
    %13 = vector.load %arg8[%c0_15, %c0_16] : memref<1x32xf32, #tpu.memory_space<vmem>>, vector<1x32xf32>
    %14 = vector.broadcast %13 : vector<1x32xf32> to vector<16x32xf32>
    %15 = arith.addf %12, %14 : vector<16x32xf32>
    %c0_17 = arith.constant 0 : index
    %c0_18 = arith.constant 0 : index
    %16 = vector.load %arg6[%c0_17, %c0_18] : memref<32x32xf32, #tpu.memory_space<vmem>>, vector<32x32xf32>
    %cst_19 = arith.constant dense<0.000000e+00> : vector<16x32xf32>
    %17 = tpu.matmul %5, %16, %cst_19 {dimension_numbers = #tpu.dot_dimension_numbers<[1], [0], [0], [1], [0, 0, 1, 1], [], []>} : vector<16x32xf32>, vector<32x32xf32>, vector<16x32xf32> -> vector<16x32xf32>
    %c0_20 = arith.constant 0 : index
    %c0_21 = arith.constant 0 : index
    %18 = vector.load %arg9[%c0_20, %c0_21] : memref<1x32xf32, #tpu.memory_space<vmem>>, vector<1x32xf32>
    %19 = vector.broadcast %18 : vector<1x32xf32> to vector<16x32xf32>
    %20 = arith.addf %17, %19 : vector<16x32xf32>
    %21 = vector.shape_cast %10 : vector<16x32xf32> to vector<2x8x32xf32>
    %22 = vector.shape_cast %15 : vector<16x32xf32> to vector<2x8x32xf32>
    %23 = vector.shape_cast %20 : vector<16x32xf32> to vector<2x8x32xf32>
    "tpu.trace_start"() <{level = 10 : i32, message = "bqd,bkd->bqk"}> : () -> ()
    %cst_22 = arith.constant dense<0.000000e+00> : vector<2x8x8xf32>
    %24 = tpu.matmul %21, %22, %cst_22 {dimension_numbers = #tpu.dot_dimension_numbers<[2], [2], [1], [1], [0, 0, 0, 1, 1, 1], [0], [0]>} : vector<2x8x32xf32>, vector<2x8x32xf32>, vector<2x8x8xf32> -> vector<2x8x8xf32>
    "tpu.trace_stop"() : () -> ()
    %cst_23 = arith.constant dense<0xFF800000> : vector<2x8xf32>
    %25 = vector.multi_reduction <maximumf>, %24, %cst_23 [2] : vector<2x8x8xf32> to vector<2x8xf32>
    %26 = vector.shape_cast %25 : vector<2x8xf32> to vector<2x8x1xf32>
    %27 = vector.broadcast %26 : vector<2x8x1xf32> to vector<2x8x8xf32>
    %28 = arith.subf %24, %27 : vector<2x8x8xf32>
    %29 = math.exp %28 : vector<2x8x8xf32>
    %cst_24 = arith.constant dense<0.000000e+00> : vector<2x8xf32>
    %30 = vector.multi_reduction <add>, %29, %cst_24 [2] : vector<2x8x8xf32> to vector<2x8xf32>
    %31 = vector.shape_cast %30 : vector<2x8xf32> to vector<2x8x1xf32>
    "tpu.trace_start"() <{level = 10 : i32, message = "bqk,bkd->bqd"}> : () -> ()
    %cst_25 = arith.constant dense<0.000000e+00> : vector<2x8x32xf32>
    %32 = tpu.matmul %29, %23, %cst_25 {dimension_numbers = #tpu.dot_dimension_numbers<[2], [1], [1], [2], [0, 0, 0, 1, 1, 2], [0], [0]>} : vector<2x8x8xf32>, vector<2x8x32xf32>, vector<2x8x32xf32> -> vector<2x8x32xf32>
    "tpu.trace_stop"() : () -> ()
    %33 = tpu.reciprocal %31 : vector<2x8x1xf32> -> vector<2x8x1xf32>
    %34 = vector.broadcast %33 : vector<2x8x1xf32> to vector<2x8x32xf32>
    %35 = arith.mulf %32, %34 : vector<2x8x32xf32>
    %c0_26 = arith.constant 0 : index
    %c0_27 = arith.constant 0 : index
    %c0_28 = arith.constant 0 : index
    %36 = vector.load %arg10[%c0_26, %c0_27, %c0_28] : memref<2x8x32xf32, #tpu.memory_space<vmem>>, vector<2x8x32xf32>
    tpu.vector_store %arg10[%c0_26, %c0_27, %c0_28], %35 {strides = array<i32>} : memref<2x8x32xf32, #tpu.memory_space<vmem>>, vector<2x8x32xf32>,
    return
  }
  func.func @transform_0(%arg0: i32) -> (i32, i32, i32) {
    %c0_i32 = arith.constant 0 : i32
    %c0_i32_0 = arith.constant 0 : i32
    %c0_i32_1 = arith.constant 0 : i32
    return %arg0, %c0_i32, %c0_i32_0 : i32, i32, i32
  }
  func.func @transform_1(%arg0: i32) -> (i32, i32, i32) {
    %c0_i32 = arith.constant 0 : i32
    %c0_i32_0 = arith.constant 0 : i32
    %c0_i32_1 = arith.constant 0 : i32
    return %arg0, %c0_i32, %c0_i32_0 : i32, i32, i32
  }
  func.func @transform_2(%arg0: i32) -> (i32, i32, i32) {
    %c0_i32 = arith.constant 0 : i32
    %c0_i32_0 = arith.constant 0 : i32
    %c0_i32_1 = arith.constant 0 : i32
    return %arg0, %c0_i32, %c0_i32_0 : i32, i32, i32
  }
  func.func @transform_3(%arg0: i32) -> (i32, i32) {
    %c0_i32 = arith.constant 0 : i32
    %c0_i32_0 = arith.constant 0 : i32
    %c0_i32_1 = arith.constant 0 : i32
    return %c0_i32, %c0_i32_0 : i32, i32
  }
  func.func @transform_4(%arg0: i32) -> (i32, i32) {
    %c0_i32 = arith.constant 0 : i32
    %c0_i32_0 = arith.constant 0 : i32
    %c0_i32_1 = arith.constant 0 : i32
    return %c0_i32, %c0_i32_0 : i32, i32
  }
  func.func @transform_5(%arg0: i32) -> (i32, i32) {
    %c0_i32 = arith.constant 0 : i32
    %c0_i32_0 = arith.constant 0 : i32
    %c0_i32_1 = arith.constant 0 : i32
    return %c0_i32, %c0_i32_0 : i32, i32
  }
  func.func @transform_6(%arg0: i32) -> (i32, i32) {
    %c0_i32 = arith.constant 0 : i32
    %c0_i32_0 = arith.constant 0 : i32
    %c0_i32_1 = arith.constant 0 : i32
    return %c0_i32, %c0_i32_0 : i32, i32
  }
  func.func @transform_7(%arg0: i32) -> (i32, i32) {
    %c0_i32 = arith.constant 0 : i32
    %c0_i32_0 = arith.constant 0 : i32
    %c0_i32_1 = arith.constant 0 : i32
    return %c0_i32, %c0_i32_0 : i32, i32
  }
  func.func @transform_8(%arg0: i32) -> (i32, i32) {
    %c0_i32 = arith.constant 0 : i32
    %c0_i32_0 = arith.constant 0 : i32
    %c0_i32_1 = arith.constant 0 : i32
    return %c0_i32, %c0_i32_0 : i32, i32
  }
  func.func @transform_9(%arg0: i32) -> (i32, i32, i32) {
    %c0_i32 = arith.constant 0 : i32
    %c0_i32_0 = arith.constant 0 : i32
    %c0_i32_1 = arith.constant 0 : i32
    return %arg0, %c0_i32, %c0_i32_0 : i32, i32, i32
  }
}

</mosaic_0001>

<bundles_post_ra>
// kernel: tpu_custom_call.1
= control target key start
LH: loop header
LB: loop body
LE: loop exit
PB: predicated region body
PF: predicated region fallthrough
CT: control target
= control target key end

     0   :  { %14 = vsyncpa [#allocation3], 0  ;;  %s754_s0 = inlined_call_operand.hbm [shape: f32[2,8,32], index: 0, kind: input, shape index: {}]   ;;  %s755_s1 = inlined_call_operand.hbm [shape: f32[2,8,32], index: 1, kind: input, shape index: {}]   ;;  %s756_s2 = inlined_call_operand.hbm [shape: f32[2,8,32], index: 2, kind: input, shape index: {}]   ;;  %s757_s3 = inlined_call_operand.hbm [shape: f32[32,32], index: 3, kind: input, shape index: {}]   ;;  %s758_s4 = inlined_call_operand.hbm [shape: f32[32,32], index: 4, kind: input, shape index: {}]   ;;  %s759_s5 = inlined_call_operand.hbm [shape: f32[32,32], index: 5, kind: input, shape index: {}]   ;;  %s760_s6 = inlined_call_operand.vmem [shape: f32[1,32], index: 6, kind: input, shape index: {}]   ;;  %s761_s7 = inlined_call_operand.vmem [shape: f32[1,32], index: 7, kind: input, shape index: {}]   ;;  %s762_s8 = inlined_call_operand.vmem [shape: f32[1,32], index: 8, kind: input, shape index: {}]   ;;  %s763_s9 = inlined_call_operand.hbm [shape: f32[2,8,32], index: 9, kind: output, shape index: {}]  }
   0x1   :  { %15 = vsyncpa [#allocation6], 0 }
   0x2   :  { %16 = vsyncpa [#allocation9], 0 }
   0x3   :  { %17 = vsyncpa [#allocation12], 0 }
   0x4   :  { %18 = vsyncpa [#allocation4], 0  ;;  %s36_s11 = sshll.u32 %s755_s1, 4  ;;  %s626_s12 = smov [#allocation5]   ;;  %s37_s11 = int_to_ptr.hbm [resolvable:$true] %s36_s11 }
   0x5   :  { %s38_s13 = sshll.u32 %s626_s12, 4  ;;  %s62_s16 = sshll.u32 %s757_s3, 4  ;;  %s39_s13 = int_to_ptr.vmem [resolvable:$true] %s38_s13  ;;  %s63_s16 = int_to_ptr.hbm [resolvable:$true] %s62_s16 }
   0x6   :  { %s627_s17 = smov 128   ;;  %s628_s18 = smov 8  }
   0x7   :  { %44 = dma.hbm_to_vmem [thread:$0]  %s37_s11, 256, %s39_s13, [#allocation6], %s627_s17, %s627_s17, %s628_s18  }
   0x8   :  { %s629_s19 = smov [#allocation8]   ;;  %s23_s1 = sshll.u32 %s754_s0, 4  ;;  %s24_s1 = int_to_ptr.hbm [resolvable:$true] %s23_s1 }
   0x9   :  { %s64_s20 = sshll.u32 %s629_s19, 4  ;;  %s49_s24 = sshll.u32 %s756_s2, 4  ;;  %s65_s20 = int_to_ptr.vmem [resolvable:$true] %s64_s20  ;;  %s50_s24 = int_to_ptr.hbm [resolvable:$true] %s49_s24 }
   0xa   :  { %70 = dma.hbm_to_vmem [thread:$0]  %s63_s16, 512, %s65_s20, [#allocation9], %s627_s17, %s627_s17, %s628_s18  }
   0xb   :  { %s630_s25 = smov [#allocation2]   ;;  %s631_s27 = smov [#allocation7]  }
   0xc   :  { %s25_s26 = sshll.u32 %s630_s25, 4  ;;  %s51_s0 = sshll.u32 %s631_s27, 4  ;;  %s26_s26 = int_to_ptr.vmem [resolvable:$true] %s25_s26  ;;  %s52_s0 = int_to_ptr.vmem [resolvable:$true] %s51_s0 }
   0xd   :  { %31 = dma.hbm_to_vmem [thread:$0]  %s24_s1, 256, %s26_s26, [#allocation3], %s627_s17, %s627_s17, %s628_s18  }
   0xe   :  { %s75_s30 = sshll.u32 %s758_s4, 4  ;;  %s88_s11 = sshll.u32 %s759_s5, 4  ;;  %s76_s30 = int_to_ptr.hbm [resolvable:$true] %s75_s30  ;;  %s89_s11 = int_to_ptr.hbm [resolvable:$true] %s88_s11 }
   0xf   :  { %57 = dma.hbm_to_vmem [thread:$0]  %s50_s24, 256, %s52_s0, [#allocation6], %s627_s17, %s627_s17, %s628_s18  }
  0x10   :  { %s632_s12 = smov [#allocation10]   ;;  %s633_s14 = smov [#allocation11]  }
  0x11   :  { %s77_s13 = sshll.u32 %s632_s12, 4  ;;  %s90_s4 = sshll.u32 %s633_s14, 4  ;;  %s78_s13 = int_to_ptr.vmem [resolvable:$true] %s77_s13  ;;  %s91_s4 = int_to_ptr.vmem [resolvable:$true] %s90_s4 }
  0x12   :  { %83 = dma.hbm_to_vmem [thread:$0]  %s76_s30, 512, %s78_s13, [#allocation9], %s627_s17, %s627_s17, %s628_s18  }
  0x13   :  { %96 = dma.hbm_to_vmem [thread:$0]  %s89_s11, 512, %s91_s4, [#allocation12], %s627_s17, %s627_s17, %s628_s18  }
  0x14   :  { %616 = dma.done.wait [#allocation3], 256  }
  0x15   :  { %617 = vsyncadd [#allocation3], 4294967040 }
  0x16   :  { %618 = dma.done.wait [#allocation6], 512  }
  0x17   :  { %619 = vsyncadd [#allocation6], 4294966784 }
  0x18   :  { %620 = dma.done.wait [#allocation9], 1024  }
  0x19   :  { %621 = vsyncadd [#allocation9], 4294966272 }
  0x1a   :  { %622 = dma.done.wait [#allocation12], 512  }
  0x1b   :  { %623 = vsyncadd [#allocation12], 4294966784  ;;  %v174_v0 = vld [vmem:[#allocation10 + $0x18] sm:$0xff]  ;;  %v173_v1 = vld [vmem:[#allocation10 + $0x10] sm:$0xff]  ;;  %vm141_vm0 = vcmask 261120   ;;  %vm297_vm1 = vcmask 64512  }
  0x1c   :  { %v136_v2 = vld [vmem:[#allocation8 + $0x18] sm:$0xff]  ;;  %197 = vmatpush.msra.mxu1 %v174_v0  ;;  %v135_v3 = vld [vmem:[#allocation8 + $0x10] sm:$0xff]  ;;  %v172_v4 = vld [vmem:[#allocation10 + $0x8] sm:$0xff]  ;;  %s400_s1 = sshll.u32 %s763_s9, 4  ;;  %s401_s1 = int_to_ptr.hbm [resolvable:$true] %s400_s1 }
  0x1d   :  { %160 = vmatpush.msra.mxu0 %v136_v2  ;;  %v134_v5 = vld [vmem:[#allocation8 + $0x8] sm:$0xff]  ;;  %v171_v6 = vld [vmem:[#allocation10] sm:$0xff]  ;;  %v127_v9 = vld [vmem:[#allocation2] sm:$0xff] }
  0x1e   :  { %198 = vmatpush.msra.mxu1 %v173_v1  ;;  %v133_v7 = vld [vmem:[#allocation8] sm:$0xff]  ;;  %v130_v10 = vld [vmem:[#allocation5 + $0x8] sm:$0xff]  ;;  %v128_v11 = vld [vmem:[#allocation2 + $0x8] sm:$0xff] }
  0x1f   :  { %161 = vmatpush.msra.mxu0 %v135_v3  ;;  %v129_v8 = vld [vmem:[#allocation5] sm:$0xff]  ;;  %v211_v12 = vld [vmem:[#allocation11 + $0x18] sm:$0xff]  ;;  %v210_v13 = vld [vmem:[#allocation11 + $0x10] sm:$0xff] }
  0x20   :  { %199 = vmatpush.msra.mxu1 %v172_v4  ;;  %234 = vmatpush.msra.mxu2 %v211_v12  ;;  %v209_v14 = vld [vmem:[#allocation11 + $0x8] sm:$0xff]  ;;  %v208_v15 = vld [vmem:[#allocation11] sm:$0xff]  ;;  %v131_v16 = vld [vmem:[#allocation7] sm:$0xff] }
  0x21   :  { %162 = vmatpush.msra.mxu0 %v134_v5  ;;  %v132_v17 = vld [vmem:[#allocation7 + $0x8] sm:$0xff]  ;;  %v437_v18 = vld [vmem:[%s761_s7] ss:$0 sm:$0xff] }
  0x22   :  { %200 = vmatpush.msra.mxu1 %v171_v6  ;;  %235 = vmatpush.msra.mxu2 %v210_v13  ;;  %v438_v19 = vld [vmem:[%s760_s6] ss:$0 sm:$0xff] }
  0x23   :  { %163 = vmatpush.msra.mxu0 %v133_v7  ;;  %418 = vmatmul.msk.f32.vlgmr.msra.gmra.mxu1 %vm141_vm0, %v129_v8  ;;  %v439_v32 = vld [vmem:[%s762_s8] ss:$0 sm:$0xff]  ;;  %s634_s8 = smov [#allocation13]  }
  0x24   :  { %416 = vmatmul.msk.f32.vlgmr.msra.gmra.mxu0 %vm141_vm0, %v127_v9  ;;  %236 = vmatpush.msra.mxu2 %v209_v14  ;;  %s398_s20 = sshll.u32 %s634_s8, 4  ;;  %s399_s20 = int_to_ptr.vmem [resolvable:$true] %s398_s20 }
  0x26   :  { %237 = vmatpush.msra.mxu2 %v208_v15 }
  0x27   :  { %420 = vmatmul.msk.f32.vlgmr.msra.gmra.mxu2 %vm141_vm0, %v131_v16 }
  0x2b   :  { %419 = vmatmul.msk.f32.gmra.mxu1 %vm141_vm0, %v130_v10 }
  0x2c   :  { %417 = vmatmul.msk.f32.gmra.mxu0 %vm141_vm0, %v128_v11 }
  0x2f   :  { %421 = vmatmul.msk.f32.gmra.mxu2 %vm141_vm0, %v132_v17 }
  0xa0   :  { %v202_v20 = vpop.f32.mrf.mxu1 }
  0xa1   :  { %v165_v21 = vpop.f32.mrf.mxu0  ;;  %v203_v22 = vadd.f32 %v437_v18, %v202_v20 }
  0xa2   :  { %v166_v23 = vadd.f32 %v438_v19, %v165_v21 }
  0xa3   :  { %422 = vmatpush.xpose.msk.msra.mxu3 %vm141_vm0, %v203_v22 }
  0xa6   :  { %423 = vmatmul.msk.f32.vlgmr.msra.gmra.mxu3 %vm141_vm0, %v166_v23 }
  0xa8   :  { %v205_v24 = vpop.f32.mrf.mxu1 }
  0xa9   :  { %v168_v25 = vpop.f32.mrf.mxu0  ;;  %v206_v26 = vadd.f32 %v437_v18, %v205_v24 }
  0xaa   :  { %v169_v27 = vadd.f32 %v438_v19, %v168_v25  ;;  %v239_v33 = vpop.f32.mrf.mxu2 }
  0xab   :  { %424 = vmatpush.xpose.msk.msrb.mxu3 %vm141_vm0, %v206_v26  ;;  %v240_v34 = vadd.f32 %v439_v32, %v239_v33 }
  0xae   :  { %425 = vmatmul.msk.f32.vlgmr.msrb.gmra.mxu3 %vm141_vm0, %v169_v27 }
  0xaf   :  { %334 = vmatpush.msra.mxu3 %v240_v34 }
  0xb2   :  { %v242_v35 = vpop.f32.mrf.mxu2 }
  0xb3   :  { %v243_v36 = vadd.f32 %v439_v32, %v242_v35 }
  0xb5   :  { %357 = vmatpush.msrb.mxu0 %v243_v36 }
 0x129   :  { %v268_v28 = vpop.f32.mrf.mxu3 }
 0x12a   :  { %v298_v29 = vsel %vm297_vm1, %v268_v28, -inf }
 0x12b   :  { %299 = vmax.xlane.f32.xlu0 %v298_v29 }
 0x131   :  { %v294_v30 = vpop.f32.mrf.mxu3 }
 0x132   :  { %v301_v31 = vsel %vm297_vm1, %v294_v30, -inf }
 0x133   :  { %302 = vmax.xlane.f32.xlu0 %v301_v31 }
 0x19e   :  { %v300_v37 = vpop.xlane.xlu0 %299 }
 0x19f   :  { %v304_v38 = vsub.f32 %v268_v28, %v300_v37 }
 0x1a1   :  { %v306_v39 = vmul.f32 1.442695, %v304_v38 }
 0x1a3   :  { %440 = vpow2.f32 %v306_v39 }
 0x1a6   :  { %v303_v40 = vpop.xlane.xlu0 %302 }
 0x1a7   :  { %v305_v41 = vsub.f32 %v294_v30, %v303_v40 }
 0x1a9   :  { %v441_v42 = vpop.eup %440  ;;  %v308_v43 = vmul.f32 1.442695, %v305_v41 }
 0x1aa   :  { %426 = vmatmul.msk.f32.vlgmr.msra.gmra.mxu3 %vm297_vm1, %v441_v42  ;;  %v310_v44 = vsel %vm297_vm1, %v441_v42, 0.0 }
 0x1ab   :  { %442 = vpow2.f32 %v308_v43  ;;  %311 = vadd.xlane.f32.xlu1 %v310_v44 }
 0x1b1   :  { %v443_v45 = vpop.eup %442 }
 0x1b2   :  { %427 = vmatmul.msk.f32.vlgmr.msrb.gmra.mxu0 %vm297_vm1, %v443_v45  ;;  %v313_v46 = vsel %vm297_vm1, %v443_v45, 0.0 }
 0x1b3   :  { %314 = vadd.xlane.f32.xlu1 %v313_v46 }
 0x21e   :  { %v312_v47 = vpop.xlane.xlu1 %311 }
 0x21f   :  { %444 = vrcp.f32 %v312_v47  ;;  %v373_v52 = vand.u32 2147483648, %v312_v47  ;;  %v371_v54 = vand.u32 2147483647, %v312_v47  ;;  %vm367_vm3 = vweird.f32 %v312_v47 }
 0x221   :  { %v374_v57 = vor.u32 1.1754944e-38, %v373_v52  ;;  %vm372_vm5 = vcmp.eq.f32.partialorder %v371_v54, 8.507059e+37 }
 0x225   :  { %v445_v48 = vpop.eup %444 }
 0x226   :  { %v363_v49 = vmul.f32 %v445_v48, %v312_v47  ;;  %v315_v50 = vpop.xlane.xlu1 %314  ;;  %vm368_vm2 = vweird.f32 %v445_v48 }
 0x227   :  { %446 = vrcp.f32 %v315_v50  ;;  %vm369_vm4 = vmor %vm367_vm3, %vm368_vm2  ;;  %v387_v0 = vand.u32 2147483648, %v315_v50  ;;  %v385_v2 = vand.u32 2147483647, %v315_v50  ;;  %vm381_vm7 = vweird.f32 %v315_v50 }
 0x228   :  { %v364_v51 = vsub.f32 1.0, %v363_v49 }
 0x229   :  { %v388_v4 = vor.u32 1.1754944e-38, %v387_v0  ;;  %vm386_vm9 = vcmp.eq.f32.partialorder %v385_v2, 8.507059e+37 }
 0x22a   :  { %v365_v53 = vmul.f32 %v445_v48, %v364_v51 }
 0x22c   :  { %v366_v55 = vadd.f32 %v445_v48, %v365_v53 }
 0x22d   :  { %v447_v56 = vpop.eup %446  ;;  %v336_v60 = vpop.f32.mrf.mxu3 }
 0x22e   :  { %v377_v58 = vmul.f32 %v447_v56, %v315_v50  ;;  %v370_v59 = vsel %vm369_vm4, %v445_v48, %v366_v55  ;;  %vm382_vm6 = vweird.f32 %v447_v56 }
 0x22f   :  { %v375_v61 = vsel %vm372_vm5, %v374_v57, %v370_v59  ;;  %vm383_vm8 = vmor %vm381_vm7, %vm382_vm6  ;;  %v359_v6 = vpop.f32.mrf.mxu0 }
 0x230   :  { %v378_v62 = vsub.f32 1.0, %v377_v58  ;;  %v390_v63 = vmul.f32 %v375_v61, %v336_v60 }
 0x232   :  { %v379_v1 = vmul.f32 %v447_v56, %v378_v62  ;;  %392 = vst.msk [vmem:[#allocation13] sm:$0xff] %vm141_vm0, %v390_v63 }
 0x234   :  { %v380_v3 = vadd.f32 %v447_v56, %v379_v1 }
 0x236   :  { %v384_v5 = vsel %vm383_vm8, %v447_v56, %v380_v3 }
 0x237   :  { %v389_v7 = vsel %vm386_vm9, %v388_v4, %v384_v5 }
 0x238   :  { %v391_v8 = vmul.f32 %v389_v7, %v359_v6 }
 0x23a   :  { %393 = vst.msk [vmem:[#allocation13 + $0x8] sm:$0xff] %vm141_vm0, %v391_v8 }
 0x23b   :  { %406 = dma.vmem_to_hbm [thread:$0]  %s399_s20, 256, %s401_s1, [#allocation4], %s627_s17, %s627_s17, %s628_s18  }
 0x23c   :  { %624 = dma.done.wait [#allocation4], 256  }
 0x23d   :  { %625 = vsyncadd [#allocation4], 4294967040 }
 0x23e   :  { %411 = vsyncpa [#allocation3], 1 }
 0x23f   :  { %412 = vsyncpa [#allocation6], 1 }
 0x240   :  { %413 = vsyncpa [#allocation9], 1 }
 0x241   :  { %414 = vsyncpa [#allocation12], 1 }
 0x242   :  { %415 = vsyncpa [#allocation4], 1 }

</bundles_post_ra>
